<compile_context>
chip_gen: v6e
topology: v6e:2x2x1
jax: 0.10.0
libtpu: 0.0.40
codegen_flags: <defaults>
</compile_context>

<pallas_src>
import functools

import jax
import jax.numpy as jnp
import numpy as np
from jax.experimental import pallas as pl
from jax.experimental.pallas import tpu as pltpu


def _copy_kernel(x_ref, o_ref):
    # The entire "forward pass" of NothingNet: return x.
    o_ref[...] = x_ref[...]


def _choose_2d_layout(total: int, last_dim: int):
    """Pick a lane-dense (rows, cols) factorization of `total` elements."""
    for lane_width in (2048, 1024, 512, 256, 128):
        if total % lane_width == 0:
            return total // lane_width, lane_width
    # Fall back to the original trailing dim, then to a single row.
    if last_dim > 0 and total % last_dim == 0:
        return total // last_dim, last_dim
    return 1, total


def _choose_tile_rows(rows: int, cols: int, itemsize: int,
                      max_tile_bytes: int = 4 * 1024 * 1024) -> int:
    """Largest multiple-of-8 divisor of `rows` with one tile <= max_tile_bytes.

    4 MiB tiles -> 2 in-buffers + 2 out-buffers = 16 MiB pipeline footprint,
    safely under the 32 MiB scoped-VMEM limit we request (v5e/v6e/v7x safe).
    """
    if rows % 8 != 0:
        # Full extent along the dim is always a legal block shape.
        return rows
    max_rows = max(8, max_tile_bytes // max(1, cols * itemsize))
    best = None
    r = 8
    while r <= rows and r <= max_rows:
        if rows % r == 0:
            best = r
        r += 8
    return best if best is not None else rows


@functools.partial(jax.jit, donate_argnums=(0,))
def _identity_copy_2d(x2d: jax.Array) -> jax.Array:
    rows, cols = x2d.shape
    tile_r = _choose_tile_rows(rows, cols, x2d.dtype.itemsize)
    grid = (rows // tile_r,)

    return pl.pallas_call(
        _copy_kernel,
        out_shape=jax.ShapeDtypeStruct((rows, cols), x2d.dtype),
        grid=grid,
        in_specs=[pl.BlockSpec((tile_r, cols), lambda i: (i, 0))],
        out_specs=pl.BlockSpec((tile_r, cols), lambda i: (i, 0)),
        input_output_aliases={0: 0},  # alias output onto the donated input buffer
        compiler_params=pltpu.CompilerParams(
            dimension_semantics=("parallel",),   # shard rows across TCs on v7x
            vmem_limit_bytes=32 * 1024 * 1024,   # safe on v5e / v6e / v7x
        ),
    )(x2d)


def nothing_net_forward(x: jax.Array) -> jax.Array:
    """True NothingNet forward: identity — zero cost, no kernel launched."""
    return x


def nothing_net_forward_pallas(x: jax.Array) -> jax.Array:
    """Identity realized as an explicit Pallas copy kernel.

    Lane-dense tiled layout + aliased output; use only when a kernel launch is
    actually required (otherwise call `nothing_net_forward`, which is free).
    """
    if x.size == 0:
        return x
    orig_shape = x.shape
    last_dim = orig_shape[-1] if x.ndim > 0 else 1
    rows, cols = _choose_2d_layout(x.size, last_dim)
    x2d = x.reshape(rows, cols)
    out2d = _identity_copy_2d(x2d)
    return out2d.reshape(orig_shape)


if __name__ == "__main__":
    key = jax.random.PRNGKey(0)
    # Small NCHW-shaped example input consistent with a typical conv-style state.
    x = jax.random.normal(key, (2, 4, 16, 16), dtype=jnp.float32)

    # Snapshot reference values before any buffer donation can occur.
    x_np = np.asarray(x)

    # Fast path: the module's true forward is identity (no copy at all).
    y_fast = nothing_net_forward(x)
    assert y_fast is x

    # Kernel path: run the Pallas identity-copy kernel once.
    y = nothing_net_forward_pallas(x)
    y = jax.block_until_ready(y)

    assert y.shape == x_np.shape and y.dtype == x_np.dtype
    assert np.array_equal(np.asarray(y), x_np)

    print("KERNEL_OK")
</pallas_src>

<mosaic_0001>
module attributes {stable_mosaic.version = 11 : i64} {
  func.func @_copy_kernel(%arg0: i32, %arg1: memref<1x2048xf32, #tpu.memory_space<vmem>>, %arg2: memref<1x2048xf32, #tpu.memory_space<vmem>>) attributes {dimension_semantics = [#tpu.dimension_semantics<parallel>], iteration_bounds = array<i64: 1>, scalar_prefetch = 0 : i64, scratch_operands = 0 : i64, tpu.core_type = #tpu.core_type<tc>, window_params = [{transform_indices = @transform_0, window_bounds = array<i64: 1, 2048>}, {transform_indices = @transform_1, window_bounds = array<i64: 1, 2048>}]} {
    %c0 = arith.constant 0 : index
    %c0_0 = arith.constant 0 : index
    %0 = vector.load %arg1[%c0, %c0_0] : memref<1x2048xf32, #tpu.memory_space<vmem>>, vector<1x2048xf32>
    %c0_1 = arith.constant 0 : index
    %c0_2 = arith.constant 0 : index
    %1 = vector.load %arg2[%c0_1, %c0_2] : memref<1x2048xf32, #tpu.memory_space<vmem>>, vector<1x2048xf32>
    tpu.vector_store %arg2[%c0_1, %c0_2], %0 {strides = array<i32>} : memref<1x2048xf32, #tpu.memory_space<vmem>>, vector<1x2048xf32>,
    return
  }
  func.func @transform_0(%arg0: i32) -> (i32, i32) {
    %c0_i32 = arith.constant 0 : i32
    %c0_i32_0 = arith.constant 0 : i32
    return %arg0, %c0_i32 : i32, i32
  }
  func.func @transform_1(%arg0: i32) -> (i32, i32) {
    %c0_i32 = arith.constant 0 : i32
    %c0_i32_0 = arith.constant 0 : i32
    return %arg0, %c0_i32 : i32, i32
  }
}

</mosaic_0001>

<bundles_post_ra>
// kernel: _identity_copy_2d.1
= control target key start
LH: loop header
LB: loop body
LE: loop exit
PB: predicated region body
PF: predicated region fallthrough
CT: control target
= control target key end

     0   :  { %6 = vsyncpa [#allocation3], 0  ;;  %s104_s0 = inlined_call_operand.hbm [shape: f32[1,2048], index: 0, kind: input, shape index: {}, may-alias: {0,1}]   ;;  %s105_s1 = inlined_call_operand.hbm [shape: f32[1,2048], index: 1, kind: output, shape index: {}, may-alias: {0,1}]  }
   0x1   :  { %7 = vsyncpa [#allocation4], 0  ;;  %s86_s6 = smov [#allocation2]  }
   0x2   :  { %s14_s7 = sshll.u32 %s86_s6, 4  ;;  %s15_s7 = int_to_ptr.vmem [resolvable:$true] %s14_s7 }
   0x3   :  { %s50_s8 = scalar_lea.vmem %s15_s7, 256  ;;  %p55_p1 = scmp.lt.s32.totalorder %s15_s7, %s15_s7 }
   0x4   :  { %p51_p0 = scmp.ne.s32.totalorder %s15_s7, %s50_s8  ;;  %p56_p2 = scmp.lt.s32.totalorder %s50_s8, %s50_s8 }
   0x6   :  { %p57_p3 = por %p56_p2, %p55_p1 }
   0x8   :  { %p58_p4 = pnand %p57_p3, %p51_p0 }
   0xa   :  { %61 = shalt.err (!%p58_p4)
}
   0xb   :  { %17 = dma.hbm_to_vmem [thread:$0]  %s104_s0, 256, %s15_s7, [#allocation3]  }
   0xc   :  { %82 = dma.done.wait [#allocation3], 256  }
   0xd   :  { %83 = vsyncadd [#allocation3], 4294967040  ;;  %s87_s11 = smov [#allocation5]   ;;  %v21_v0 = vld [vmem:[#allocation2] sm:$0xff]  ;;  %v22_v1 = vld [vmem:[#allocation2 + $0x8] sm:$0xff] }
   0xe   :  { %s31_s12 = sshll.u32 %s87_s11, 4  ;;  %23 = vst [vmem:[#allocation5] sm:$0xff] %v21_v0  ;;  %24 = vst [vmem:[#allocation5 + $0x8] sm:$0xff] %v22_v1  ;;  %s32_s12 = int_to_ptr.vmem [resolvable:$true] %s31_s12 }
   0xf   :  { %s62_s13 = scalar_lea.vmem %s32_s12, 256  ;;  %p67_p6 = scmp.lt.s32.totalorder %s32_s12, %s32_s12 }
  0x10   :  { %p63_p5 = scmp.ne.s32.totalorder %s32_s12, %s62_s13  ;;  %p68_p7 = scmp.lt.s32.totalorder %s62_s13, %s62_s13 }
  0x12   :  { %p69_p8 = por %p68_p7, %p67_p6 }
  0x14   :  { %p70_p9 = pnand %p69_p8, %p63_p5 }
  0x16   :  { %73 = shalt.err (!%p70_p9)
}
  0x17   :  { %34 = dma.vmem_to_hbm [thread:$0]  %s32_s12, 256, %s105_s1, [#allocation4]  }
  0x18   :  { %84 = dma.done.wait [#allocation4], 256  }
  0x19   :  { %85 = vsyncadd [#allocation4], 4294967040 }
  0x1a   :  { %38 = vsyncpa [#allocation3], 1 }
  0x1b   :  { %39 = vsyncpa [#allocation4], 1 }

</bundles_post_ra>
